<compile_context>
chip_gen: v6e
topology: v6e:2x2x1
jax: 0.10.0
libtpu: 0.0.40
codegen_flags: <defaults>
</compile_context>

<pallas_src>
import functools
import math

import jax
import jax.numpy as jnp
from jax.experimental import pallas as pl
from jax.experimental.pallas import tpu as pltpu

EPS = 1e-8
_LANES = 128
_SUBLANES = 8
_FALLBACK_VMEM_CAP = 64 * 1024 * 1024   # v7x-sized conservative fallback
_HEADROOM_BYTES = 8 * 1024 * 1024       # params + compiler internal scratch


def _vmem_capacity_bytes():
    """Physical per-core VMEM; conservative fallback if the query fails."""
    try:
        info = pltpu.get_tpu_info()
        cap = getattr(info, "vmem_capacity_bytes", None)
        if cap:
            return int(cap)
    except Exception:
        pass
    return _FALLBACK_VMEM_CAP


# --------------------------------------------------------------------------
# Kernels
# --------------------------------------------------------------------------
def _gln_fused_kernel(x_ref, w_ref, b_ref, o_ref, *, eps):
    """Whole per-batch slice resident: 1 HBM read + 1 HBM write of x.

    Two-sweep statistics (mean, then centered second moment) for numerical
    robustness -- the extra sweep only re-reads VMEM, not HBM.  x_ref is read
    per use so no persistent whole-block f32 temporary is kept (matters for
    bf16 inputs on v7x's 64 MiB VMEM).
    """
    inv_n = 1.0 / float(x_ref.shape[1] * x_ref.shape[2])
    mean = jnp.sum(x_ref[...].astype(jnp.float32)) * inv_n
    var = jnp.sum(jnp.square(x_ref[...].astype(jnp.float32) - mean)) * inv_n
    inv_std = jax.lax.rsqrt(var + eps)
    scale = w_ref[...].astype(jnp.float32) * inv_std      # (1, C, 1)
    shift = b_ref[...].astype(jnp.float32) - mean * scale # (1, C, 1)
    o_ref[...] = (x_ref[...].astype(jnp.float32) * scale + shift).astype(o_ref.dtype)


def _gln_stats_kernel(x_ref, sum_ref, sq_ref, *, l_total, block_l, tiles_per_split):
    """Tiled reduction: accumulate per-(batch, split) sum / sum-of-squares.

    Grid is (n_split, N, tiles_per_split); the output blocks (1, 1, 8, 128)
    map to the same block index for every L-tile, so they stay VMEM-resident
    across the "arbitrary" reduction axis.  The split axis lets both v7x
    TensorCores sweep disjoint halves of the slice even for N == 1.
    """
    s = pl.program_id(0)
    t = pl.program_id(2)

    @pl.when(t == 0)
    def _():
        sum_ref[...] = jnp.zeros_like(sum_ref)
        sq_ref[...] = jnp.zeros_like(sq_ref)

    x = x_ref[...].astype(jnp.float32)                  # (1, C, block_l)
    # Mask lanes past the end of the slice.  The split may cover a ragged
    # number of tiles (the index_map clamps the block index, so duplicated
    # blocks simply mask to zero here) and the last real tile may be ragged.
    base = (s * tiles_per_split + t) * block_l
    lane = jax.lax.broadcasted_iota(jnp.int32, x.shape, dimension=2)
    x = jnp.where(base + lane < l_total, x, 0.0)

    # Full reduce: lowering accumulates all vregs with VALU adds and finishes
    # with a single one-vreg cross-lane reduce -- stays hidden under the HBM
    # read and barely touches the XLU.
    sum_ref[...] = sum_ref[...] + jnp.sum(x)
    sq_ref[...] = sq_ref[...] + jnp.sum(x * x)


def _gln_norm_kernel(x_ref, scale_ref, shift_ref, o_ref):
    """Elementwise pass with the affine folded into a single scale/shift."""
    o_ref[...] = (x_ref[...].astype(jnp.float32) * scale_ref[...]
                  + shift_ref[...]).astype(o_ref.dtype)


# --------------------------------------------------------------------------
# Wrapper
# --------------------------------------------------------------------------
def global_layer_norm(x, weight=None, bias=None, *, eps=EPS,
                      force_tiled=False, block_l=None, donate_input=False):
    """Global layer norm over (C, K, S) (or (C, L)) per batch element.

    x: [N, C, K, S] or [N, C, L]; weight/bias: [C, 1, 1] / [C, 1] / [C] or None.
    """
    orig_shape = x.shape
    if x.ndim == 4:
        N, C, K, S = x.shape
        L = K * S
    elif x.ndim == 3:
        N, C, L = x.shape
    else:
        raise ValueError("expected x of rank 3 or 4, got shape %s" % (x.shape,))

    dtype = x.dtype
    if weight is None:
        weight = jnp.ones((C,), dtype=jnp.float32)
    if bias is None:
        bias = jnp.zeros((C,), dtype=jnp.float32)
    w1 = jnp.asarray(weight, jnp.float32).reshape(C)
    b1 = jnp.asarray(bias, jnp.float32).reshape(C)

    # --- Sublane packing for small C: fold lanes into sublanes --------------
    # (N, C, L) -> (N, C*r, L/r), r = 8/gcd(C, 8); each channel row splits into
    # r consecutive sub-rows (a pure row-major reshape => HBM bitcast).
    r = _SUBLANES // math.gcd(C, _SUBLANES)
    if r > 1 and L % r == 0:
        Cp, Lp = C * r, L // r
    else:
        r = 1
        Cp, Lp = C, L
        # TODO(synk): C % 8 != 0 with L not divisible by 8/gcd(C,8) keeps the
        # sublane-padding waste; an element-level remainder split would fix it.
    x3 = x.reshape(N, Cp, Lp)
    wp = jnp.repeat(w1, r).reshape(1, Cp, 1)   # packed row i -> channel i // r
    bp = jnp.repeat(b1, r).reshape(1, Cp, 1)

    # --- Generation-aware, honest VMEM budget --------------------------------
    vmem_cap = _vmem_capacity_bytes()
    vmem_limit = (vmem_cap * 3) // 4              # 96 MiB v5e/v6e, 48 MiB v7x
    budget = max(vmem_limit - _HEADROOM_BYTES, 4 * 1024 * 1024)

    itemsize = jnp.dtype(dtype).itemsize
    pad_c = ((Cp + _SUBLANES - 1) // _SUBLANES) * _SUBLANES
    io_block = pad_c * Lp * itemsize                       # one in == one out block
    f32_tmp = pad_c * Lp * 4 if dtype != jnp.float32 else 0
    # 2x double-buffered in + 2x double-buffered out + possible f32 temp.
    fits_fused = (not force_tiled) and (4 * io_block + f32_tmp <= budget)

    compiler_params_1d = pltpu.CompilerParams(
        dimension_semantics=("parallel",), vmem_limit_bytes=vmem_limit)

    if fits_fused:
        # TODO(synk): for N < number-of-TensorCores (v7x batch-1) the fused path
        # leaves one core idle and has no intra-step DMA/compute overlap; a
        # manual emit_pipeline chunked variant would recover ~15-25%.
        out3 = pl.pallas_call(
            functools.partial(_gln_fused_kernel, eps=eps),
            out_shape=jax.ShapeDtypeStruct((N, Cp, Lp), dtype),
            grid_spec=pltpu.PrefetchScalarGridSpec(
                num_scalar_prefetch=0,
                grid=(N,),
                in_specs=[
                    pl.BlockSpec((1, Cp, Lp), lambda n: (n, 0, 0)),
                    pl.BlockSpec((1, Cp, 1), lambda n: (0, 0, 0)),
                    pl.BlockSpec((1, Cp, 1), lambda n: (0, 0, 0)),
                ],
                out_specs=pl.BlockSpec((1, Cp, Lp), lambda n: (n, 0, 0)),
            ),
            compiler_params=compiler_params_1d,
            input_output_aliases=({0: 0} if donate_input else {}),
        )(x3, wp, bp)
        return out3.reshape(orig_shape)

    # ----- Tiled two-pass path (slice too big for the VMEM budget) -----------
    if block_l is None:
        # Sized for pass 2: 2x in + 2x out double-buffered (+ f32 temp if bf16).
        per_elem = pad_c * (4 * itemsize + (4 if dtype != jnp.float32 else 0))
        block_l = max(_LANES, (budget // per_elem) // _LANES * _LANES)
    if Lp <= block_l:
        block_l = Lp                              # single full-width tile
    if block_l != Lp and block_l % _LANES != 0:
        raise ValueError("block_l must be a multiple of 128 or equal to the "
                         "(packed) K*S extent")

    grid_l = pl.cdiv(Lp, block_l)
    # 2-way L split: keeps both v7x TensorCores busy for small N; harmless on
    # single-core chips (just two resident accumulator vregs per batch).
    n_split = 2 if grid_l >= 2 else 1
    tps = pl.cdiv(grid_l, n_split)
    last_tile = grid_l - 1

    def x_stats_map(s, n, t):
        # Clamp so a ragged split never produces an out-of-range block index;
        # the kernel masks the duplicated block by global element index.
        return (n, 0, jnp.minimum(s * tps + t, last_tile))

    # Pass 1: per-(batch, split) sum / sumsq (reduction axis "arbitrary").
    sums, sqs = pl.pallas_call(
        functools.partial(_gln_stats_kernel, l_total=Lp, block_l=block_l,
                          tiles_per_split=tps),
        out_shape=(
            jax.ShapeDtypeStruct((N, n_split, _SUBLANES, _LANES), jnp.float32),
            jax.ShapeDtypeStruct((N, n_split, _SUBLANES, _LANES), jnp.float32),
        ),
        grid_spec=pltpu.PrefetchScalarGridSpec(
            num_scalar_prefetch=0,
            grid=(n_split, N, tps),
            in_specs=[pl.BlockSpec((1, Cp, block_l), x_stats_map)],
            out_specs=(
                pl.BlockSpec((1, 1, _SUBLANES, _LANES), lambda s, n, t: (n, s, 0, 0)),
                pl.BlockSpec((1, 1, _SUBLANES, _LANES), lambda s, n, t: (n, s, 0, 0)),
            ),
        ),
        compiler_params=pltpu.CompilerParams(
            dimension_semantics=("parallel", "parallel", "arbitrary"),
            vmem_limit_bytes=vmem_limit),
    )(x3)

    # Tiny O(N*C) fold of mean/var + affine into scale/shift (not per-element).
    # One-sweep E[x^2]-E[x]^2 is kept here (a second HBM sweep would cost 1x
    # bandwidth); the clamp guards tiny cancellation.
    inv_n = 1.0 / float(Cp * Lp)
    total = sums[:, :, 0, 0].sum(axis=1)                          # (N,)
    total_sq = sqs[:, :, 0, 0].sum(axis=1)                        # (N,)
    mean = total * inv_n
    var = jnp.maximum(total_sq * inv_n - mean * mean, 0.0)
    inv_std = jax.lax.rsqrt(var + eps)
    scale = wp.reshape(1, Cp) * inv_std[:, None]                  # (N, Cp)
    shift = bp.reshape(1, Cp) - mean[:, None] * scale             # (N, Cp)
    scale3 = scale.reshape(N, Cp, 1)
    shift3 = shift.reshape(N, Cp, 1)

    # Pass 2: elementwise normalize; both grid axes independent ("parallel").
    out3 = pl.pallas_call(
        _gln_norm_kernel,
        out_shape=jax.ShapeDtypeStruct((N, Cp, Lp), dtype),
        grid_spec=pltpu.PrefetchScalarGridSpec(
            num_scalar_prefetch=0,
            grid=(N, grid_l),
            in_specs=[
                pl.BlockSpec((1, Cp, block_l), lambda n, t: (n, 0, t)),
                pl.BlockSpec((1, Cp, 1), lambda n, t: (n, 0, 0)),
                pl.BlockSpec((1, Cp, 1), lambda n, t: (n, 0, 0)),
            ],
            out_specs=pl.BlockSpec((1, Cp, block_l), lambda n, t: (n, 0, t)),
        ),
        compiler_params=pltpu.CompilerParams(
            dimension_semantics=("parallel", "parallel"),
            vmem_limit_bytes=vmem_limit),
        input_output_aliases=({0: 0} if donate_input else {}),
    )(x3, scale3, shift3)
    return out3.reshape(orig_shape)


# --------------------------------------------------------------------------
# Reference + self-test
# --------------------------------------------------------------------------
def _reference(x, weight, bias):
    mean = jnp.mean(x, axis=(1, 2, 3), keepdims=True)
    var = jnp.mean((x - mean) ** 2, axis=(1, 2, 3), keepdims=True)
    w = weight.reshape(1, -1, 1, 1)
    b = bias.reshape(1, -1, 1, 1)
    return w * (x - mean) / jnp.sqrt(var + EPS) + b


if __name__ == "__main__":
    key = jax.random.PRNGKey(0)
    kx, kw, kb, kx2 = jax.random.split(key, 4)

    # --- Main shape from the 4-D forward path: [N, C, K, S] ------------------
    N, C, K, S = 2, 4, 16, 16
    x = jax.random.normal(kx, (N, C, K, S), dtype=jnp.float32)
    weight = 1.0 + 0.1 * jax.random.normal(kw, (C, 1, 1), dtype=jnp.float32)
    bias = 0.1 * jax.random.normal(kb, (C, 1, 1), dtype=jnp.float32)
    ref = _reference(x, weight, bias)

    # Fused single-pass path (C=4 exercises the sublane-packing wrapper).
    out_fused = jax.block_until_ready(global_layer_norm(x, weight, bias))
    assert out_fused.shape == (N, C, K, S)
    assert jnp.allclose(out_fused, ref, atol=1e-5, rtol=1e-5)

    # Tiled two-pass path, explicit 128-wide tiles.
    out_tiled = jax.block_until_ready(
        global_layer_norm(x, weight, bias, force_tiled=True, block_l=128))
    assert jnp.allclose(out_tiled, ref, atol=1e-5, rtol=1e-5)

    # Tiled path with the default (budget-derived) block_l.
    out_tiled_full = jax.block_until_ready(
        global_layer_norm(x, weight, bias, force_tiled=True))
    assert jnp.allclose(out_tiled_full, ref, atol=1e-5, rtol=1e-5)

    # 3-D input branch [N, C, L].
    out_3d = jax.block_until_ready(
        global_layer_norm(x.reshape(N, C, K * S), weight.reshape(C, 1),
                          bias.reshape(C, 1)))
    assert jnp.allclose(out_3d.reshape(N, C, K, S), ref, atol=1e-5, rtol=1e-5)

    # bf16 input exercises the dtype-aware budget and the fused f32 casts.
    x_bf = x.astype(jnp.bfloat16)
    ref_bf = _reference(x_bf.astype(jnp.float32), weight, bias)
    out_bf = jax.block_until_ready(global_layer_norm(x_bf, weight, bias))
    assert out_bf.dtype == jnp.bfloat16
    assert jnp.allclose(out_bf.astype(jnp.float32), ref_bf, atol=3e-2, rtol=3e-2)

    # Multi-tile tiled path with the 2-way L split (N=1, odd tile count ->
    # exercises the clamped index map + masking).
    N2, C2, K2, S2 = 1, 8, 80, 8
    x2 = jax.random.normal(kx2, (N2, C2, K2, S2), dtype=jnp.float32)
    w2 = jnp.ones((C2, 1, 1), dtype=jnp.float32)
    b2 = jnp.zeros((C2, 1, 1), dtype=jnp.float32)
    ref2 = _reference(x2, w2, b2)
    out2 = jax.block_until_ready(
        global_layer_norm(x2, w2, b2, force_tiled=True, block_l=128))
    assert jnp.allclose(out2, ref2, atol=1e-5, rtol=1e-5)

    print("KERNEL_OK")
</pallas_src>

<mosaic_0001>
module attributes {stable_mosaic.version = 11 : i64} {
  func.func @_gln_fused_kernel(%arg0: i32, %arg1: memref<1x8x128xf32, #tpu.memory_space<vmem>>, %arg2: memref<1x8x1xf32, #tpu.memory_space<vmem>>, %arg3: memref<1x8x1xf32, #tpu.memory_space<vmem>>, %arg4: memref<1x8x128xf32, #tpu.memory_space<vmem>>) attributes {dimension_semantics = [#tpu.dimension_semantics<parallel>], iteration_bounds = array<i64: 2>, scalar_prefetch = 0 : i64, scratch_operands = 0 : i64, tpu.core_type = #tpu.core_type<tc>, window_params = [{transform_indices = @transform_0, window_bounds = array<i64: 1, 8, 128>}, {pipeline_mode = #tpu.pipeline_mode<synchronous>, transform_indices = @transform_1, window_bounds = array<i64: 1, 8, 1>}, {pipeline_mode = #tpu.pipeline_mode<synchronous>, transform_indices = @transform_2, window_bounds = array<i64: 1, 8, 1>}, {transform_indices = @transform_3, window_bounds = array<i64: 1, 8, 128>}]} {
    %c0 = arith.constant 0 : index
    %c0_0 = arith.constant 0 : index
    %c0_1 = arith.constant 0 : index
    %0 = vector.load %arg1[%c0, %c0_0, %c0_1] : memref<1x8x128xf32, #tpu.memory_space<vmem>>, vector<1x8x128xf32>
    %1 = vector.shape_cast %0 : vector<1x8x128xf32> to vector<1x1x8x128xf32>
    %cst = arith.constant dense<0.000000e+00> : vector<1xf32>
    %2 = vector.multi_reduction <add>, %1, %cst [1, 2, 3] : vector<1x1x8x128xf32> to vector<1xf32>
    %3 = vector.shape_cast %2 : vector<1xf32> to vector<1x1x1x1xf32>
    %4 = vector.extract %3[0, 0, 0, 0] : f32 from vector<1x1x1x1xf32>
    %cst_2 = arith.constant 9.765625E-4 : f32
    %5 = arith.mulf %4, %cst_2 : f32
    %c0_3 = arith.constant 0 : index
    %c0_4 = arith.constant 0 : index
    %c0_5 = arith.constant 0 : index
    %6 = vector.load %arg1[%c0_3, %c0_4, %c0_5] : memref<1x8x128xf32, #tpu.memory_space<vmem>>, vector<1x8x128xf32>
    %7 = vector.broadcast %5 : f32 to vector<1x8x128xf32>
    %8 = arith.subf %6, %7 : vector<1x8x128xf32>
    %9 = arith.mulf %8, %8 : vector<1x8x128xf32>
    %10 = vector.shape_cast %9 : vector<1x8x128xf32> to vector<1x1x8x128xf32>
    %cst_6 = arith.constant dense<0.000000e+00> : vector<1xf32>
    %11 = vector.multi_reduction <add>, %10, %cst_6 [1, 2, 3] : vector<1x1x8x128xf32> to vector<1xf32>
    %12 = vector.shape_cast %11 : vector<1xf32> to vector<1x1x1x1xf32>
    %13 = vector.extract %12[0, 0, 0, 0] : f32 from vector<1x1x1x1xf32>
    %cst_7 = arith.constant 9.765625E-4 : f32
    %14 = arith.mulf %13, %cst_7 : f32
    %cst_8 = arith.constant 9.99999993E-9 : f32
    %15 = arith.addf %14, %cst_8 : f32
    %16 = math.rsqrt %15 : f32
    %c0_9 = arith.constant 0 : index
    %c0_10 = arith.constant 0 : index
    %c0_11 = arith.constant 0 : index
    %17 = vector.load %arg2[%c0_9, %c0_10, %c0_11] : memref<1x8x1xf32, #tpu.memory_space<vmem>>, vector<1x8x1xf32>
    %18 = vector.broadcast %16 : f32 to vector<1x8x1xf32>
    %19 = arith.mulf %17, %18 : vector<1x8x1xf32>
    %c0_12 = arith.constant 0 : index
    %c0_13 = arith.constant 0 : index
    %c0_14 = arith.constant 0 : index
    %20 = vector.load %arg3[%c0_12, %c0_13, %c0_14] : memref<1x8x1xf32, #tpu.memory_space<vmem>>, vector<1x8x1xf32>
    %21 = vector.broadcast %5 : f32 to vector<1x8x1xf32>
    %22 = arith.mulf %21, %19 : vector<1x8x1xf32>
    %23 = arith.subf %20, %22 : vector<1x8x1xf32>
    %c0_15 = arith.constant 0 : index
    %c0_16 = arith.constant 0 : index
    %c0_17 = arith.constant 0 : index
    %24 = vector.load %arg1[%c0_15, %c0_16, %c0_17] : memref<1x8x128xf32, #tpu.memory_space<vmem>>, vector<1x8x128xf32>
    %25 = vector.broadcast %19 : vector<1x8x1xf32> to vector<1x8x128xf32>
    %26 = arith.mulf %24, %25 : vector<1x8x128xf32>
    %27 = vector.broadcast %23 : vector<1x8x1xf32> to vector<1x8x128xf32>
    %28 = arith.addf %26, %27 : vector<1x8x128xf32>
    %c0_18 = arith.constant 0 : index
    %c0_19 = arith.constant 0 : index
    %c0_20 = arith.constant 0 : index
    %29 = vector.load %arg4[%c0_18, %c0_19, %c0_20] : memref<1x8x128xf32, #tpu.memory_space<vmem>>, vector<1x8x128xf32>
    tpu.vector_store %arg4[%c0_18, %c0_19, %c0_20], %28 {strides = array<i32>} : memref<1x8x128xf32, #tpu.memory_space<vmem>>, vector<1x8x128xf32>,
    return
  }
  func.func @transform_0(%arg0: i32) -> (i32, i32, i32) {
    %c0_i32 = arith.constant 0 : i32
    %c0_i32_0 = arith.constant 0 : i32
    %c0_i32_1 = arith.constant 0 : i32
    return %arg0, %c0_i32, %c0_i32_0 : i32, i32, i32
  }
  func.func @transform_1(%arg0: i32) -> (i32, i32, i32) {
    %c0_i32 = arith.constant 0 : i32
    %c0_i32_0 = arith.constant 0 : i32
    %c0_i32_1 = arith.constant 0 : i32
    %c0_i32_2 = arith.constant 0 : i32
    return %c0_i32, %c0_i32_0, %c0_i32_1 : i32, i32, i32
  }
  func.func @transform_2(%arg0: i32) -> (i32, i32, i32) {
    %c0_i32 = arith.constant 0 : i32
    %c0_i32_0 = arith.constant 0 : i32
    %c0_i32_1 = arith.constant 0 : i32
    %c0_i32_2 = arith.constant 0 : i32
    return %c0_i32, %c0_i32_0, %c0_i32_1 : i32, i32, i32
  }
  func.func @transform_3(%arg0: i32) -> (i32, i32, i32) {
    %c0_i32 = arith.constant 0 : i32
    %c0_i32_0 = arith.constant 0 : i32
    %c0_i32_1 = arith.constant 0 : i32
    return %arg0, %c0_i32, %c0_i32_0 : i32, i32, i32
  }
}

</mosaic_0001>

<bundles_post_ra>
// kernel: tpu_custom_call.1
= control target key start
LH: loop header
LB: loop body
LE: loop exit
PB: predicated region body
PF: predicated region fallthrough
CT: control target
= control target key end

     0   :  { %8 = vsyncpa [#allocation3], 0  ;;  %s523_s0 = inlined_call_operand.vmem [shape: f32[2,8,128], index: 0, kind: input, shape index: {}]   ;;  %s524_s1 = inlined_call_operand.vmem [shape: f32[1,8,1], index: 1, kind: input, shape index: {}]   ;;  %s525_s2 = inlined_call_operand.vmem [shape: f32[1,8,1], index: 2, kind: input, shape index: {}]   ;;  %s526_s3 = inlined_call_operand.hbm [shape: f32[2,8,128], index: 3, kind: output, shape index: {}]  }
   0x1   :  { %10 = vsyncpa [#allocation3 + $0x1], 0  ;;  %s430_s12 = smov 0   ;;  %s432_s13 = smov 0  }
   0x2   :  { %s434_s14 = smov 0   ;;  %s436_s15 = smov 0  }
   0x3 LB: > { %s451_s16 = sadd.s32 4294967295, %s406_s15   ;;  %s286_s17 = sadd.s32 4294967294, %s406_s15   ;;  %s406_s15 = sphi %s436_s15, %s532_s15   ;;  %s402_s14 = sphi %s434_s14, %s531_s14   ;;  %s398_s13 = sphi %s432_s13, %s530_s13   ;;  %s394_s12 = sphi %s430_s12, %s529_s12  }
   0x4   : > { %s455_s18 = sadd.s32 1, %s406_s15   ;;  %s91_s19 = sadd.s32 1, %s402_s14 }
   0x5   : > { %s88_s20 = ssub.s32 %s406_s15, %s455_s18  ;;  %p101_p0 = scmp.ne.s32.totalorder %s402_s14, %s398_s13 }
   0x6   : > { %p89_p1 = scmp.eq.s32.totalorder %s88_s20, 0  ;;  %p102_p2 = scmp.eq.s32.totalorder %s451_s16, 1 }
   0x7   : > { %p107_p3 = scmp.ne.s32.totalorder %s398_s13, %s394_s12  ;;  %p108_p4 = scmp.eq.s32.totalorder %s286_s17, 1 }
   0x8   : > { %s466_s21 = scalar_select %p89_p1, %s402_s14, %s91_s19  }
   0x9   : > { %p468_p5 = por %p102_p2, %p101_p0  ;;  %p472_p6 = por %p108_p4, %p107_p3 }
   0xa   : > { %p289_p7 = scmp.ge.s32.totalorder %s406_s15, 1  ;;  %p139_p8 = scmp.lt.s32.totalorder %s406_s15, 3 }
   0xc   : > { %p140_p9 = pnand %p289_p7, %p139_p8 }
   0xd   : > { %p162_p10 = scmp.lt.s32.totalorder (!%p140_p9), %s451_s16, 1  ;;  %s159_s17 = sand.u32 (!%p140_p9), 1, %s398_s13  }
   0xe   : > { %143 = sbr.rel (%p140_p9) target bundleno = 646 (0x286), region = 32  ;;  %s290_s19 = sshll.u32 (!%p140_p9), %s159_s17, 3 }
   0xf   : > { %s293_s20 = sshll.u32 (!%p140_p9), %s451_s16, 7 }
  0x13   : > { %s163_s24 = scalar_select %p162_p10, %s451_s16, 1  ;;  %v408_v15 = vmov 0   ;;  %v194_v21 = vld [vmem:[%s524_s1] sm:$0xff] }
  0x14   : > { %342 = vset.pattern.permute.xlu1 %v408_v15  ;;  %343 = vset.pattern.permute.xlu0 %v408_v15  ;;  %v197_v24 = vld [vmem:[%s525_s2] sm:$0xff] }
  0x15   : > { %s291_s25 = sshll.u32 %s163_s24, 3  ;;  %s161_s24 = scalar_lea.vmem [#allocation2], %s290_s19 }
  0x16   : > { %s165_s28 = scalar_lea.vmem %s523_s0, %s291_s25  ;;  %s227_s25 = sshll.u32 %s161_s24, 4  ;;  %s228_s25 = int_to_ptr.vmem [resolvable:$true] %s227_s25 }
  0x17   : > { %v166_v0 = vld [vmem:[%s165_s28] sm:$0xff]  ;;  %s225_s28 = scalar_lea.hbm %s526_s3, %s293_s20 }
  0x18   : > { %167 = vadd.xlane.f32.xlu0 %v166_v0 }
  0xa1   : > { %v168_v1 = vpop.xlane.xlu0 %167 }
  0xa2   : > { %v169_v2 = vrot.slane %v168_v1, 4 }
  0xa4   : > { %v170_v3 = vadd.f32 %v169_v2, %v168_v1 }
  0xa6   : > { %v171_v4 = vrot.slane %v170_v3, 2 }
  0xa8   : > { %v172_v5 = vadd.f32 %v171_v4, %v170_v3 }
  0xaa   : > { %v173_v6 = vrot.slane %v172_v5, 1 }
  0xac   : > { %v174_v7 = vadd.f32 %v173_v6, %v172_v5 }
  0xae   : > { %296 = vpush %v174_v7 }
  0xdf   : > { %s297_s29 = spop %296 }
  0xe0   : > { %s176_s30 = smul.f32 0.0009765625, %s297_s29  ;;  %s214_s29 = scalar_lea.sflag [#allocation3], %s159_s17 }
  0xe2   : > { %v177_v8 = vstv %s176_s30  ;;  %s346_s30 = scalar_lea.vmem %s228_s25, 128 }
  0xe3   : > { %v178_v9 = vsub.f32 %v166_v0, %v177_v8  ;;  %p347_p11 = scmp.ne.s32.totalorder %s228_s25, %s346_s30 }
  0xe5   : > { %v179_v10 = vmul.f32 %v178_v9, %v178_v9  ;;  %p348_p12 = pnand %p347_p11, %p468_p5 }
  0xe7   : > { %180 = vadd.xlane.f32.xlu0 %v179_v10  ;;  %p349_p13 = pneg %p348_p12 }
 0x170   : > { %v181_v11 = vpop.xlane.xlu0 %180 }
 0x171   : > { %v182_v12 = vrot.slane %v181_v11, 4 }
 0x173   : > { %v183_v13 = vadd.f32 %v182_v12, %v181_v11 }
 0x175   : > { %v184_v14 = vrot.slane %v183_v13, 2 }
 0x177   : > { %v185_v16 = vadd.f32 %v184_v14, %v183_v13 }
 0x179   : > { %v186_v17 = vrot.slane %v185_v16, 1 }
 0x17b   : > { %v187_v18 = vadd.f32 %v186_v17, %v185_v16 }
 0x17d   : > { %298 = vpush %v187_v18 }
 0x1ae   : > { %s299_s4 = spop %298 }
 0x1af   : > { %s189_s5 = smul.f32 0.0009765625, %s299_s4  ;;  %s409_s4 = smov [#allocation2]  }
 0x1b1   : > { %s190_s6 = sadd.f32 1e-08, %s189_s5  ;;  %s350_s5 = sshll.u32 %s409_s4, 4  ;;  %s351_s5 = int_to_ptr.vmem [resolvable:$false] %s350_s5 }
 0x1b2   : > { %s352_s16 = scalar_lea.vmem %s351_s5, 256  ;;  %p353_p0 = scmp.lt.s32.totalorder %s228_s25, %s351_s5 }
 0x1b3   : > { %v191_v19 = vstv %s190_s6  ;;  %p354_p1 = scmp.lt.s32.totalorder %s352_s16, %s346_s30 }
 0x1b4   : > { %344 = vrsqrt.f32 %v191_v19 }
 0x1b5   : > { %p355_p2 = por %p354_p1, %p353_p0 }
 0x1b7   : > { %p356_p3 = pnand %p355_p2, %p349_p13 }
 0x1c1   : > { %v345_v20 = vpop.eup %344 }
 0x1c2   : > { %300 = vpush %v345_v20 }
 0x1f3   : > { %s301_s9 = spop %300 }
 0x1f4   : > { %v195_v22 = vstv %s301_s9 }
 0x1f5   : > { %v196_v23 = vmul.f32 %v195_v22, %v194_v21 }
 0x1f7   : > { %v198_v25 = vmul.f32 %v196_v23, %v177_v8  ;;  %202 = vperm.xlu1 %342, %v196_v23  }
 0x1f9   : > { %v199_v26 = vsub.f32 %v197_v24, %v198_v25 }
 0x1fb   : > { %208 = vperm.xlu1 %342, %v199_v26  }
 0x272   : > { %v203_v27 = vpop.permute.xlu1 %202 }
 0x273   : > { %v205_v28 = vmul.f32 %v203_v27, %v166_v0 }
 0x276   : > { %v209_v29 = vpop.permute.xlu1 %208 }
 0x277   : > { %v211_v30 = vadd.f32 %v209_v29, %v205_v28 }
 0x279   : > { %212 = vst [vmem:[%s161_s24] sm:$0xff] %v211_v30 }
 0x27a   : > { %359 = shalt.err (!%p356_p3)
}
 0x27b   : > { %s360_s6 = scalar_lea.hbm %s225_s28, 128  ;;  %s364_s9 = scalar_lea.hbm %s526_s3, 256 }
 0x27c   : > { %p361_p4 = scmp.ne.s32.totalorder %s225_s28, %s360_s6  ;;  %p365_p9 = scmp.lt.s32.totalorder %s225_s28, %s526_s3 }
 0x27d   : > { %p366_p10 = scmp.lt.s32.totalorder %s364_s9, %s360_s6 }
 0x27e   : > { %p362_p7 = pnand %p361_p4, %p468_p5 }
 0x27f   : > { %p367_p11 = por %p366_p10, %p365_p9 }
 0x280   : > { %p363_p8 = pneg %p362_p7 }
 0x282   : > { %p368_p12 = pnand %p367_p11, %p363_p8 }
 0x284   : > { %371 = shalt.err (!%p368_p12)
}
 0x285   : > { %302 = dma.vmem_to_hbm [thread:$0]  (%p468_p5), %s228_s25, 128, %s225_s28, %s214_s29  }
 0x286 PF: > { %p308_p13 = scmp.ge.s32.totalorder %s406_s15, 2  ;;  %s239_s17 = sand.u32 1, %s394_s12  }
 0x287   : > { %s240_s19 = scalar_lea.sflag [#allocation3], %s239_s17 }
 0x288   : > { %p305_p0 = pnand %p308_p13, %p472_p6 }
 0x28a   : > { %p306_p1 = pneg %p305_p0 }
 0x28c   : > { %389 = dma.done.wait (%p306_p1), %s240_s19, 128  }
 0x28d   : > { %391 = vsyncadd (%p306_p1), %s240_s19, 4294967168  ;;  %p13_p2 = scmp.ge.s32.totalorder %s455_s18, 4   ;;  %s529_s12 = smov %s398_s13 }
 0x28e   : > { %s530_s13 = smov %s402_s14  ;;  %s531_s14 = smov %s466_s21 }
 0x28f   : > { %s532_s15 = smov %s455_s18  ;;  %15 = sbr.rel (!%p13_p2) target bundleno = 3 (0x3), region = 67 }
 0x294   :  { %245 = vsyncpa [#allocation3], 1 }
 0x295   :  { %247 = vsyncpa [#allocation3 + $0x1], 1 }

</bundles_post_ra>
